<compile_context>
chip_gen: v7x
topology: tpu7x:2x2x1
jax: 0.10.0
libtpu: 0.0.40
codegen_flags: <defaults>
</compile_context>

<pallas_src>
import math

import jax
import jax.numpy as jnp
from jax.experimental import pallas as pl
from jax.experimental.pallas import tpu as pltpu


# Below this batch size a batch grid's per-step overhead (~0.35 us) exceeds the
# per-batch compute of these tiny heads; run everything in one resident step.
_MIN_BATCH_FOR_GRID = 8


# ----------------------------------------------------------------------------
# Pallas kernel: all heads for a (Bblk, C, HW) slab, one output ref per head.
#   x_ref     : (Bblk, C, HW)   channel-major pixels
#   w_refs[h] : (O_h, C)        per-head 1x1-conv weight
#   b_refs[h] : (O_h, 1)        per-head bias (f32)
#   o_refs[h] : (Bblk, O_h, HW) per-head output, written directly (no padding)
# ----------------------------------------------------------------------------
def _make_heads_kernel(num_heads):
    def kernel(x_ref, *refs):
        w_refs = refs[:num_heads]
        b_refs = refs[num_heads:2 * num_heads]
        o_refs = refs[2 * num_heads:]
        b_blk = x_ref.shape[0]
        for b in range(b_blk):              # static unroll (B small, or block=1)
            xb = x_ref[b]                   # (C, HW)
            for h in range(num_heads):
                y = jnp.dot(w_refs[h][...], xb,
                            preferred_element_type=jnp.float32)
                o_refs[h][b] = (y + b_refs[h][...]).astype(o_refs[h].dtype)

    return kernel


def _fused_conv1x1_heads(x_nchw, weights, biases, out_dtype):
    """All 1x1-conv heads in ONE pallas_call.

    x_nchw : (B, C, H, W)
    weights: tuple of (O_i, C)
    biases : tuple of (O_i, 1)   (f32)
    returns: tuple of (B, O_i, H, W), one per head
    """
    B, C, H, W = x_nchw.shape
    HW = H * W
    num_heads = len(weights)

    # Free reshape: NCHW is already channel-major per batch element.
    x3d = x_nchw.reshape(B, C, HW)

    kernel = _make_heads_kernel(num_heads)
    out_shapes = tuple(
        jax.ShapeDtypeStruct((B, int(w.shape[0]), HW), out_dtype) for w in weights
    )

    if B < _MIN_BATCH_FOR_GRID:
        # Single step: whole problem resident in VMEM, no grid overhead,
        # per-head outputs written directly (no padding, no post-kernel slices).
        outs = pl.pallas_call(
            kernel,
            out_shape=out_shapes,
        )(x3d, *weights, *biases)
    else:
        # Scale-up path: one batch element per grid step, marked "parallel" so
        # the two TensorCores on v7x each take a meaningful shard.
        rep = lambda b: (0, 0)
        outs = pl.pallas_call(
            kernel,
            out_shape=out_shapes,
            grid=(B,),
            in_specs=[pl.BlockSpec((1, C, HW), lambda b: (b, 0, 0))]
            + [pl.BlockSpec(tuple(int(d) for d in w.shape), rep) for w in weights]
            + [pl.BlockSpec(tuple(int(d) for d in bb.shape), rep) for bb in biases],
            out_specs=tuple(
                pl.BlockSpec((1, int(w.shape[0]), HW), lambda b: (b, 0, 0))
                for w in weights
            ),
            compiler_params=pltpu.CompilerParams(
                dimension_semantics=("parallel",)
            ),
        )(x3d, *weights, *biases)

    return tuple(o.reshape(B, o.shape[1], H, W) for o in outs)


# ----------------------------------------------------------------------------
# HeadList equivalent
# ----------------------------------------------------------------------------
class HeadList:
    """JAX/Pallas port of the PyTorch HeadList module.

    `heads` is a list of (weight, bias) pairs, weight shape (O_i, C) for a
    1x1 Conv2d head.  forward(x) returns [head(x) for head in heads], matching
    the PyTorch ModuleList semantics, with all heads computed in ONE fused
    Pallas launch and each head's output emitted directly from the kernel.
    """
    # TODO(synk): arbitrary per-head nn.Module types (non 1x1-conv heads) are
    # not expressible in this fused kernel; Env_CV only uses 1x1 Conv2d heads.

    def __init__(self, heads, io_dtype=jnp.float32):
        self.heads = list(heads)
        # io_dtype=bf16 halves HBM writeback on the dominant output tensor at
        # scale (MXU-native on v6e/v7x); default f32 keeps PyTorch parity.
        self._io_dtype = io_dtype
        self._weights = tuple(
            jnp.asarray(w).astype(io_dtype) for w, _ in self.heads
        )
        # Biases stay f32: added to the f32 accumulator before the output cast.
        self._biases = tuple(
            jnp.asarray(b, jnp.float32).reshape(-1, 1) for _, b in self.heads
        )

        @jax.jit
        def _forward(x, weights, biases):
            if x.dtype != io_dtype:
                x = x.astype(io_dtype)
            return _fused_conv1x1_heads(x, weights, biases, io_dtype)

        self._forward = _forward

    def forward(self, x):
        return list(self._forward(x, self._weights, self._biases))

    __call__ = forward


def _init_conv1x1_params(key, out_ch, in_ch):
    """Deterministic init mimicking PyTorch Conv2d default (uniform +/- 1/sqrt(fan_in))."""
    kw, kb = jax.random.split(key)
    bound = 1.0 / math.sqrt(in_ch)  # kernel_size = 1 -> fan_in = in_ch
    w = jax.random.uniform(kw, (out_ch, in_ch), jnp.float32, -bound, bound)
    b = jax.random.uniform(kb, (out_ch,), jnp.float32, -bound, bound)
    return w, b


if __name__ == "__main__":
    key = jax.random.PRNGKey(0)
    k_x, k_h0, k_h1, k_h2 = jax.random.split(key, 4)

    # Small NCHW input consistent with a CV env: batch=2, channels=4, 16x16.
    B, C, H, W = 2, 4, 16, 16
    x = jax.random.normal(k_x, (B, C, H, W), dtype=jnp.float32)

    # Three heads with different output widths (e.g. policy / value / aux).
    heads = [
        _init_conv1x1_params(k_h0, 8, C),
        _init_conv1x1_params(k_h1, 16, C),
        _init_conv1x1_params(k_h2, 4, C),
    ]
    model = HeadList(heads)

    ys = model(x)
    ys = [jax.block_until_ready(y) for y in ys]

    # Sanity-check against a plain-JAX reference of the same heads.
    for (w, b), y in zip(heads, ys):
        ref = jnp.einsum("bchw,oc->bohw", x, w) + b[None, :, None, None]
        assert y.shape == ref.shape, (y.shape, ref.shape)
        assert jnp.allclose(y, ref, atol=1e-4, rtol=1e-4)

    print("KERNEL_OK")
</pallas_src>

<mosaic_0001>
module attributes {stable_mosaic.version = 11 : i64} {
  func.func @kernel(%arg0: memref<2x4x256xf32, #tpu.memory_space<vmem>>, %arg1: memref<8x4xf32, #tpu.memory_space<vmem>>, %arg2: memref<16x4xf32, #tpu.memory_space<vmem>>, %arg3: memref<4x4xf32, #tpu.memory_space<vmem>>, %arg4: memref<8x1xf32, #tpu.memory_space<vmem>>, %arg5: memref<16x1xf32, #tpu.memory_space<vmem>>, %arg6: memref<4x1xf32, #tpu.memory_space<vmem>>, %arg7: memref<2x8x256xf32, #tpu.memory_space<vmem>>, %arg8: memref<2x16x256xf32, #tpu.memory_space<vmem>>, %arg9: memref<2x4x256xf32, #tpu.memory_space<vmem>>) attributes {dimension_semantics = [], scalar_prefetch = 0 : i64, scratch_operands = 0 : i64, tpu.core_type = #tpu.core_type<tc>} {
    %c0 = arith.constant 0 : index
    %c0_0 = arith.constant 0 : index
    %c0_1 = arith.constant 0 : index
    %0 = vector.load %arg0[%c0, %c0_0, %c0_1] : memref<2x4x256xf32, #tpu.memory_space<vmem>>, vector<1x4x256xf32>
    %1 = vector.shape_cast %0 : vector<1x4x256xf32> to vector<4x256xf32>
    %c0_2 = arith.constant 0 : index
    %c0_3 = arith.constant 0 : index
    %2 = vector.load %arg1[%c0_2, %c0_3] : memref<8x4xf32, #tpu.memory_space<vmem>>, vector<8x4xf32>
    %cst = arith.constant dense<0.000000e+00> : vector<8x256xf32>
    %3 = tpu.matmul %2, %1, %cst {dimension_numbers = #tpu.dot_dimension_numbers<[1], [0], [0], [1], [0, 0, 1, 1], [], []>} : vector<8x4xf32>, vector<4x256xf32>, vector<8x256xf32> -> vector<8x256xf32>
    %c0_4 = arith.constant 0 : index
    %c0_5 = arith.constant 0 : index
    %4 = vector.load %arg4[%c0_4, %c0_5] : memref<8x1xf32, #tpu.memory_space<vmem>>, vector<8x1xf32>
    %5 = vector.broadcast %4 : vector<8x1xf32> to vector<8x256xf32>
    %6 = arith.addf %3, %5 : vector<8x256xf32>
    %c0_6 = arith.constant 0 : index
    %c0_7 = arith.constant 0 : index
    %c0_8 = arith.constant 0 : index
    %7 = vector.load %arg7[%c0_6, %c0_7, %c0_8] : memref<2x8x256xf32, #tpu.memory_space<vmem>>, vector<1x8x256xf32>
    %8 = vector.shape_cast %7 : vector<1x8x256xf32> to vector<8x256xf32>
    %9 = vector.shape_cast %6 : vector<8x256xf32> to vector<1x8x256xf32>
    tpu.vector_store %arg7[%c0_6, %c0_7, %c0_8], %9 {strides = array<i32>} : memref<2x8x256xf32, #tpu.memory_space<vmem>>, vector<1x8x256xf32>,
    %c0_9 = arith.constant 0 : index
    %c0_10 = arith.constant 0 : index
    %10 = vector.load %arg2[%c0_9, %c0_10] : memref<16x4xf32, #tpu.memory_space<vmem>>, vector<16x4xf32>
    %cst_11 = arith.constant dense<0.000000e+00> : vector<16x256xf32>
    %11 = tpu.matmul %10, %1, %cst_11 {dimension_numbers = #tpu.dot_dimension_numbers<[1], [0], [0], [1], [0, 0, 1, 1], [], []>} : vector<16x4xf32>, vector<4x256xf32>, vector<16x256xf32> -> vector<16x256xf32>
    %c0_12 = arith.constant 0 : index
    %c0_13 = arith.constant 0 : index
    %12 = vector.load %arg5[%c0_12, %c0_13] : memref<16x1xf32, #tpu.memory_space<vmem>>, vector<16x1xf32>
    %13 = vector.broadcast %12 : vector<16x1xf32> to vector<16x256xf32>
    %14 = arith.addf %11, %13 : vector<16x256xf32>
    %c0_14 = arith.constant 0 : index
    %c0_15 = arith.constant 0 : index
    %c0_16 = arith.constant 0 : index
    %15 = vector.load %arg8[%c0_14, %c0_15, %c0_16] : memref<2x16x256xf32, #tpu.memory_space<vmem>>, vector<1x16x256xf32>
    %16 = vector.shape_cast %15 : vector<1x16x256xf32> to vector<16x256xf32>
    %17 = vector.shape_cast %14 : vector<16x256xf32> to vector<1x16x256xf32>
    tpu.vector_store %arg8[%c0_14, %c0_15, %c0_16], %17 {strides = array<i32>} : memref<2x16x256xf32, #tpu.memory_space<vmem>>, vector<1x16x256xf32>,
    %c0_17 = arith.constant 0 : index
    %c0_18 = arith.constant 0 : index
    %18 = vector.load %arg3[%c0_17, %c0_18] : memref<4x4xf32, #tpu.memory_space<vmem>>, vector<4x4xf32>
    %cst_19 = arith.constant dense<0.000000e+00> : vector<4x256xf32>
    %19 = tpu.matmul %18, %1, %cst_19 {dimension_numbers = #tpu.dot_dimension_numbers<[1], [0], [0], [1], [0, 0, 1, 1], [], []>} : vector<4x4xf32>, vector<4x256xf32>, vector<4x256xf32> -> vector<4x256xf32>
    %c0_20 = arith.constant 0 : index
    %c0_21 = arith.constant 0 : index
    %20 = vector.load %arg6[%c0_20, %c0_21] : memref<4x1xf32, #tpu.memory_space<vmem>>, vector<4x1xf32>
    %21 = vector.broadcast %20 : vector<4x1xf32> to vector<4x256xf32>
    %22 = arith.addf %19, %21 : vector<4x256xf32>
    %c0_22 = arith.constant 0 : index
    %c0_23 = arith.constant 0 : index
    %c0_24 = arith.constant 0 : index
    %23 = vector.load %arg9[%c0_22, %c0_23, %c0_24] : memref<2x4x256xf32, #tpu.memory_space<vmem>>, vector<1x4x256xf32>
    %24 = vector.shape_cast %23 : vector<1x4x256xf32> to vector<4x256xf32>
    %25 = vector.shape_cast %22 : vector<4x256xf32> to vector<1x4x256xf32>
    tpu.vector_store %arg9[%c0_22, %c0_23, %c0_24], %25 {strides = array<i32>} : memref<2x4x256xf32, #tpu.memory_space<vmem>>, vector<1x4x256xf32>,
    %c1 = arith.constant 1 : index
    %c0_25 = arith.constant 0 : index
    %c0_26 = arith.constant 0 : index
    %26 = vector.load %arg0[%c1, %c0_25, %c0_26] : memref<2x4x256xf32, #tpu.memory_space<vmem>>, vector<1x4x256xf32>
    %27 = vector.shape_cast %26 : vector<1x4x256xf32> to vector<4x256xf32>
    %c0_27 = arith.constant 0 : index
    %c0_28 = arith.constant 0 : index
    %28 = vector.load %arg1[%c0_27, %c0_28] : memref<8x4xf32, #tpu.memory_space<vmem>>, vector<8x4xf32>
    %cst_29 = arith.constant dense<0.000000e+00> : vector<8x256xf32>
    %29 = tpu.matmul %28, %27, %cst_29 {dimension_numbers = #tpu.dot_dimension_numbers<[1], [0], [0], [1], [0, 0, 1, 1], [], []>} : vector<8x4xf32>, vector<4x256xf32>, vector<8x256xf32> -> vector<8x256xf32>
    %c0_30 = arith.constant 0 : index
    %c0_31 = arith.constant 0 : index
    %30 = vector.load %arg4[%c0_30, %c0_31] : memref<8x1xf32, #tpu.memory_space<vmem>>, vector<8x1xf32>
    %31 = vector.broadcast %30 : vector<8x1xf32> to vector<8x256xf32>
    %32 = arith.addf %29, %31 : vector<8x256xf32>
    %c1_32 = arith.constant 1 : index
    %c0_33 = arith.constant 0 : index
    %c0_34 = arith.constant 0 : index
    %33 = vector.load %arg7[%c1_32, %c0_33, %c0_34] : memref<2x8x256xf32, #tpu.memory_space<vmem>>, vector<1x8x256xf32>
    %34 = vector.shape_cast %33 : vector<1x8x256xf32> to vector<8x256xf32>
    %35 = vector.shape_cast %32 : vector<8x256xf32> to vector<1x8x256xf32>
    tpu.vector_store %arg7[%c1_32, %c0_33, %c0_34], %35 {strides = array<i32>} : memref<2x8x256xf32, #tpu.memory_space<vmem>>, vector<1x8x256xf32>,
    %c0_35 = arith.constant 0 : index
    %c0_36 = arith.constant 0 : index
    %36 = vector.load %arg2[%c0_35, %c0_36] : memref<16x4xf32, #tpu.memory_space<vmem>>, vector<16x4xf32>
    %cst_37 = arith.constant dense<0.000000e+00> : vector<16x256xf32>
    %37 = tpu.matmul %36, %27, %cst_37 {dimension_numbers = #tpu.dot_dimension_numbers<[1], [0], [0], [1], [0, 0, 1, 1], [], []>} : vector<16x4xf32>, vector<4x256xf32>, vector<16x256xf32> -> vector<16x256xf32>
    %c0_38 = arith.constant 0 : index
    %c0_39 = arith.constant 0 : index
    %38 = vector.load %arg5[%c0_38, %c0_39] : memref<16x1xf32, #tpu.memory_space<vmem>>, vector<16x1xf32>
    %39 = vector.broadcast %38 : vector<16x1xf32> to vector<16x256xf32>
    %40 = arith.addf %37, %39 : vector<16x256xf32>
    %c1_40 = arith.constant 1 : index
    %c0_41 = arith.constant 0 : index
    %c0_42 = arith.constant 0 : index
    %41 = vector.load %arg8[%c1_40, %c0_41, %c0_42] : memref<2x16x256xf32, #tpu.memory_space<vmem>>, vector<1x16x256xf32>
    %42 = vector.shape_cast %41 : vector<1x16x256xf32> to vector<16x256xf32>
    %43 = vector.shape_cast %40 : vector<16x256xf32> to vector<1x16x256xf32>
    tpu.vector_store %arg8[%c1_40, %c0_41, %c0_42], %43 {strides = array<i32>} : memref<2x16x256xf32, #tpu.memory_space<vmem>>, vector<1x16x256xf32>,
    %c0_43 = arith.constant 0 : index
    %c0_44 = arith.constant 0 : index
    %44 = vector.load %arg3[%c0_43, %c0_44] : memref<4x4xf32, #tpu.memory_space<vmem>>, vector<4x4xf32>
    %cst_45 = arith.constant dense<0.000000e+00> : vector<4x256xf32>
    %45 = tpu.matmul %44, %27, %cst_45 {dimension_numbers = #tpu.dot_dimension_numbers<[1], [0], [0], [1], [0, 0, 1, 1], [], []>} : vector<4x4xf32>, vector<4x256xf32>, vector<4x256xf32> -> vector<4x256xf32>
    %c0_46 = arith.constant 0 : index
    %c0_47 = arith.constant 0 : index
    %46 = vector.load %arg6[%c0_46, %c0_47] : memref<4x1xf32, #tpu.memory_space<vmem>>, vector<4x1xf32>
    %47 = vector.broadcast %46 : vector<4x1xf32> to vector<4x256xf32>
    %48 = arith.addf %45, %47 : vector<4x256xf32>
    %c1_48 = arith.constant 1 : index
    %c0_49 = arith.constant 0 : index
    %c0_50 = arith.constant 0 : index
    %49 = vector.load %arg9[%c1_48, %c0_49, %c0_50] : memref<2x4x256xf32, #tpu.memory_space<vmem>>, vector<1x4x256xf32>
    %50 = vector.shape_cast %49 : vector<1x4x256xf32> to vector<4x256xf32>
    %51 = vector.shape_cast %48 : vector<4x256xf32> to vector<1x4x256xf32>
    tpu.vector_store %arg9[%c1_48, %c0_49, %c0_50], %51 {strides = array<i32>} : memref<2x4x256xf32, #tpu.memory_space<vmem>>, vector<1x4x256xf32>,
    return
  }
}

</mosaic_0001>

<bundles_post_ra>
// kernel: _forward.1
= control target key start
LH: loop header
LB: loop body
LE: loop exit
PB: predicated region body
PF: predicated region fallthrough
CT: control target
= control target key end

     0   :  { %vm43_vm0 = vcmask 1043456   ;;  %v635_v2 = vmov 0.0   ;;  %v636_v4 = vmov 0   ;;  %vm39_vm1 = vcmask 31744   ;;  %s785_s0 = inlined_call_operand.vmem [shape: f32[2,4,256], index: 0, kind: input, shape index: {}]   ;;  %s786_s1 = inlined_call_operand.vmem [shape: f32[8,4], index: 1, kind: input, shape index: {}]   ;;  %s787_s2 = inlined_call_operand.vmem [shape: f32[16,4], index: 2, kind: input, shape index: {}]   ;;  %s788_s3 = inlined_call_operand.vmem [shape: f32[4,4], index: 3, kind: input, shape index: {}]   ;;  %s789_s6 = inlined_call_operand.vmem [shape: f32[4,1], index: 6, kind: input, shape index: {}]   ;;  %s790_s4 = inlined_call_operand.vmem [shape: f32[8,1], index: 4, kind: input, shape index: {}]   ;;  %s791_s5 = inlined_call_operand.vmem [shape: f32[16,1], index: 5, kind: input, shape index: {}]   ;;  %s792_s7 = inlined_call_operand.vmem [shape: f32[2,8,256], index: 7, kind: output, shape index: {0}]   ;;  %s793_s8 = inlined_call_operand.vmem [shape: f32[2,16,256], index: 8, kind: output, shape index: {1}]   ;;  %s794_s9 = inlined_call_operand.vmem [shape: f32[2,4,256], index: 9, kind: output, shape index: {2}]  }
   0x1   :  { %v29_v0 = vld [vmem:[%s785_s0] sm:$0xff]  ;;  %v611_v1 = vld [vmem:[%s785_s0 + $0x8] sm:$0xff]  ;;  %112 = vmatprep.mubr.f32.mxu0 %v635_v2  ;;  %205 = vmatprep.mubr.f32.mxu1 %v635_v2 }
   0x2   :  { %v38_v3 = vcombine.high %v29_v0, %v29_v0  ;;  %632 = vset.pattern.permute.xlu1 %v636_v4  ;;  %631 = vset.pattern.permute.xlu0 %v636_v4  ;;  %v30_v5 = vld [vmem:[%s786_s1] sm:$0xff]  ;;  %v318_v7 = vcombine.high %v611_v1, %v611_v1  ;;  %v122_v8 = vld [vmem:[%s787_s2 + $0x8] sm:$0xff] }
   0x3   :  { %v121_v6 = vld [vmem:[%s787_s2] sm:$0xff]  ;;  %v124_v15 = vld [vmem:[%s791_s5 + $0x8] sm:$0xff] }
   0x4   :  { %601 = vmatprep.subr.msk.mxu0 %vm43_vm0, %v38_v3  ;;  %604 = vmatprep.subr.msk.mxu1 %vm43_vm0, %v38_v3  ;;  %v222_v9 = vld [vmem:[%s788_s3] sm:$0xf] }
   0x5   :  { %602 = vmatpush1.msk.msra.mxu0 %vm43_vm0, %v29_v0  ;;  %605 = vmatpush1.msk.msra.mxu1 %vm43_vm0, %v29_v0  ;;  %v223_v10 = vld [vmem:[%s789_s6] sm:$0xf] }
   0x6   :  { %603 = vmatmul.mubr.msk.f32.vlgmr.msra.gmra.mrb[0].mxu0 %vm39_vm1, %v30_v5  ;;  %606 = vmatmul.mubr.msk.f32.vlgmr.msra.gmra.mrb[0].mxu1 %vm39_vm1, %v121_v6  ;;  %v31_v11 = vld [vmem:[%s790_s4] sm:$0xff] }
   0x7   :  { %608 = vmatprep.subr.msk.mxu0 %vm43_vm0, %v38_v3  ;;  %617 = vmatprep.subr.msk.mxu1 %vm43_vm0, %v318_v7  ;;  %v503_v12 = vld [vmem:[%s789_s6] sm:$0xf] }
   0x8   :  { %609 = vmatpush1.msk.msra.mxu0 %vm43_vm0, %v29_v0  ;;  %211 = vmatprep.mubr.f32.mxu1 %v635_v2  ;;  %v502_v13 = vld [vmem:[%s788_s3] sm:$0xf] }
   0x9   :  { %296 = vmatprep.mubr.f32.mxu0 %v635_v2  ;;  %618 = vmatpush1.msk.msra.mxu1 %vm43_vm0, %v611_v1  ;;  %v123_v14 = vld [vmem:[%s791_s5] sm:$0xff] }
   0xa   :  { %607 = vmatmul.mubr.msk.f32.gmra.mrb[2].mxu1 %vm39_vm1, %v122_v8  ;;  %610 = vmatmul.mubr.msk.f32.vlgmr.msra.gmra.mrb[2].mxu0 %vm39_vm1, %v222_v9 }
   0xb   :  { %612 = vmatprep.subr.msk.mxu0 %vm43_vm0, %v318_v7  ;;  %390 = vmatprep.mubr.f32.mxu0 %v635_v2 }
   0xc   :  { %613 = vmatpush1.msk.msra.mxu0 %vm43_vm0, %v611_v1  ;;  %484 = vmatprep.mubr.f32.mxu1 %v635_v2 }
   0xd   :  { %625 = vmatprep.subr.msk.mxu0 %vm43_vm0, %v318_v7  ;;  %226 = vperm.xlu0 %631, %v223_v10  }
   0xe   :  { %614 = vmatmul.mubr.msk.f32.vlgmr.msra.gmra.mrb[4].mxu0 %vm39_vm1, %v30_v5  ;;  %619 = vmatmul.mubr.msk.f32.vlgmr.msra.gmra.mrb[4].mxu1 %vm39_vm1, %v121_v6 }
   0xf   :  { %626 = vmatpush1.msk.msra.mxu0 %vm43_vm0, %v611_v1  ;;  %490 = vmatprep.mubr.f32.mxu1 %v635_v2 }
  0x10   :  { %576 = vmatprep.mubr.f32.mxu0 %v635_v2  ;;  %34 = vperm.xlu1 %632, %v31_v11  }
  0x11   :  { %506 = vperm.xlu0 %631, %v503_v12  }
  0x12   :  { %620 = vmatmul.mubr.msk.f32.gmra.mrb[6].mxu1 %vm39_vm1, %v122_v8  ;;  %627 = vmatmul.mubr.msk.f32.vlgmr.msra.gmra.mrb[6].mxu0 %vm39_vm1, %v502_v13 }
  0x14   :  { %127 = vperm.xlu1 %632, %v123_v14  }
  0x15   :  { %132 = vperm.xlu0 %631, %v124_v15  }
  0x18   :  { %314 = vperm.xlu1 %632, %v31_v11  }
  0x19   :  { %406 = vperm.xlu0 %631, %v123_v14  }
  0x1c   :  { %411 = vperm.xlu1 %632, %v124_v15  }
  0x8c   :  { %v227_v16 = vpop.permute.xlu0 %226 }
  0x8f   :  { %v35_v17 = vpop.permute.xlu1 %34 }
  0x90   :  { %v507_v18 = vpop.permute.xlu0 %506 }
  0x93   :  { %v128_v19 = vpop.permute.xlu1 %127 }
  0x94   :  { %v133_v20 = vpop.permute.xlu0 %132 }
  0x97   :  { %v315_v29 = vpop.permute.xlu1 %314 }
  0x98   :  { %v407_v38 = vpop.permute.xlu0 %406 }
  0x9b   :  { %v412_v48 = vpop.permute.xlu1 %411 }
  0xd9   :  { %v114_v21 = vpop.f32.mrb[0].mxu0  ;;  %v207_v22 = vpop.f32.mrb[0].mxu1 }
  0xda   :  { %v115_v23 = vadd.f32 %v114_v21, %v35_v17  ;;  %v116_v24 = vpop.f32.mrb[1].mxu0  ;;  %v208_v25 = vadd.f32 %v207_v22, %v128_v19  ;;  %v209_v26 = vpop.f32.mrb[1].mxu1 }
  0xdb   :  { %v117_v27 = vadd.f32 %v116_v24, %v35_v17  ;;  %v210_v28 = vadd.f32 %v209_v26, %v128_v19 }
  0xdc   :  { %119 = vst [vmem:[%s792_s7] sm:$0xff] %v115_v23  ;;  %218 = vst [vmem:[%s793_s8] sm:$0xff] %v208_v25 }
  0xdd   :  { %120 = vst [vmem:[%s792_s7 + $0x8] sm:$0xff] %v117_v27  ;;  %219 = vst [vmem:[%s793_s8 + $0x8] sm:$0xff] %v210_v28  ;;  %v213_v30 = vpop.f32.mrb[2].mxu1  ;;  %v298_v31 = vpop.f32.mrb[2].mxu0 }
  0xde   :  { %v214_v32 = vadd.f32 %v213_v30, %v133_v20  ;;  %v299_v33 = vadd.f32 %v298_v31, %v227_v16  ;;  %v215_v34 = vpop.f32.mrb[3].mxu1  ;;  %v300_v35 = vpop.f32.mrb[3].mxu0 }
  0xdf   :  { %v216_v36 = vadd.f32 %v215_v34, %v133_v20  ;;  %v301_v37 = vadd.f32 %v300_v35, %v227_v16 }
  0xe0   :  { %220 = vst [vmem:[%s793_s8 + $0x10] sm:$0xff] %v214_v32 }
  0xe1   :  { %221 = vst [vmem:[%s793_s8 + $0x18] sm:$0xff] %v216_v36  ;;  %v305_v39 = vcombine.low %v299_v33, %v301_v37  ;;  %v392_v40 = vpop.f32.mrb[4].mxu0  ;;  %v486_v41 = vpop.f32.mrb[4].mxu1 }
  0xe2   :  { %v393_v42 = vadd.f32 %v392_v40, %v315_v29  ;;  %v487_v43 = vadd.f32 %v486_v41, %v407_v38  ;;  %v394_v44 = vpop.f32.mrb[5].mxu0  ;;  %v488_v45 = vpop.f32.mrb[5].mxu1 }
  0xe3   :  { %307 = vst [vmem:[%s794_s9] sm:$0xff] %v305_v39  ;;  %v395_v46 = vadd.f32 %v394_v44, %v315_v29  ;;  %v489_v47 = vadd.f32 %v488_v45, %v407_v38 }
  0xe4   :  { %615 = vst [vmem:[%s792_s7 + $0x10] sm:$0xff] %v393_v42  ;;  %621 = vst [vmem:[%s793_s8 + $0x20] sm:$0xff] %v487_v43 }
  0xe5   :  { %616 = vst [vmem:[%s792_s7 + $0x18] sm:$0xff] %v395_v46  ;;  %622 = vst [vmem:[%s793_s8 + $0x28] sm:$0xff] %v489_v47  ;;  %v492_v49 = vpop.f32.mrb[6].mxu1  ;;  %v578_v50 = vpop.f32.mrb[6].mxu0 }
  0xe6   :  { %v493_v51 = vadd.f32 %v492_v49, %v412_v48  ;;  %v579_v52 = vadd.f32 %v578_v50, %v507_v18  ;;  %v494_v53 = vpop.f32.mrb[7].mxu1  ;;  %v580_v54 = vpop.f32.mrb[7].mxu0 }
  0xe7   :  { %v495_v55 = vadd.f32 %v494_v53, %v412_v48  ;;  %v581_v56 = vadd.f32 %v580_v54, %v507_v18 }
  0xe8   :  { %623 = vst [vmem:[%s793_s8 + $0x30] sm:$0xff] %v493_v51 }
  0xe9   :  { %624 = vst [vmem:[%s793_s8 + $0x38] sm:$0xff] %v495_v55  ;;  %v585_v57 = vcombine.low %v579_v52, %v581_v56 }
  0xeb   :  { %628 = vst [vmem:[%s794_s9 + $0x8] sm:$0xff] %v585_v57 }

</bundles_post_ra>
